<compile_context>
chip_gen: v6e
topology: v6e:2x2x1
jax: 0.10.0
libtpu: 0.0.40
codegen_flags: <defaults>
</compile_context>

<pallas_src>
import jax
import jax.numpy as jnp
from jax.experimental import pallas as pl
from jax.experimental.pallas import tpu as pltpu


def _vmem_capacity_bytes():
    try:
        info = pltpu.get_tpu_info()
        cap = getattr(info, "vmem_capacity_bytes", None)
        if cap:
            return int(cap)
    except Exception:
        pass
    return 64 * 2 ** 20  # conservative fallback (v7x per-core VMEM)


def _per_step_vmem_bytes(Bt, S, H, K, xbytes, obytes, cbytes, fuse_taps):
    """Per-grid-step VMEM, double-buffering already included (no extra 2x)."""
    est = 2 * Bt * S * H * xbytes             # double-buffered input block
    est += 2 * Bt * S * H * obytes            # double-buffered output block
    est += 2 * K * H * H * cbytes             # folded weights (grid-invariant)
    est += Bt * (S + K - 1) * H * cbytes      # padded-sequence scratch
    est += Bt * S * H * 4                     # f32 matmul result / accumulator
    if fuse_taps:
        est += Bt * S * K * H * cbytes        # im2col concat temp
    else:
        est += Bt * S * H * cbytes            # one shifted-slice temp at a time
    return est


def _make_textcnn_kernel(Bt, S, H, K, compute_dtype, fuse_taps):
    pad = (K - 1) // 2

    def kernel(x_ref, w_ref, o_ref, xp_ref):
        # x_ref : (Bt, S, H)        activations (channels-last)
        # w_ref : (K*H, H)          im2col-folded conv weights, compute_dtype
        # o_ref : (Bt, S, H)        output block
        # xp_ref: (Bt, S+K-1, H)    padded-sequence scratch, compute_dtype
        if pad > 0:
            zeros_edge = jnp.zeros((Bt, pad, H), xp_ref.dtype)
            xp_ref[:, :pad, :] = zeros_edge
            xp_ref[:, pad + S:, :] = zeros_edge
        # Early cast: scratch lives in compute_dtype, so the shifted slices and
        # MXU operands move half the bytes when compute_dtype is bf16.
        xp_ref[:, pad:pad + S, :] = x_ref[...].astype(xp_ref.dtype)

        if fuse_taps:
            # Small K*H: fuse all K taps into one MXU dot via in-kernel im2col.
            cols = [xp_ref[:, j:j + S, :] for j in range(K)]
            lhs = jnp.concatenate(cols, axis=-1).reshape(Bt * S, K * H)
            res = jnp.dot(lhs, w_ref[...], preferred_element_type=jnp.float32)
        else:
            # Large H: K accumulating dots over shifted slices — no lane-axis
            # concatenate relayout, no (Bt*S, K*H) temp; on v7x the MRB
            # accumulates the taps in place.
            res = jnp.zeros((Bt * S, H), jnp.float32)
            for j in range(K):
                lhs_j = xp_ref[:, j:j + S, :].reshape(Bt * S, H)
                res = res + jnp.dot(lhs_j, w_ref[j * H:(j + 1) * H, :],
                                    preferred_element_type=jnp.float32)

        # TODO(synk): for H < 128 in production, repack the result lane-dense
        # ((Bt*S*H/128, 128) output slab) to avoid masked partial stores.
        o_ref[...] = res.reshape(Bt, S, H).astype(o_ref.dtype)

    return kernel


def textcnn_forward(x, weight, *, compute_dtype=jnp.float32, fuse_taps=None):
    """TextCNN forward.

    x      : (B, S, H) activations (channels-last, PyTorch input before transpose)
    weight : (H_out, H_in, K) torch-layout Conv1d weight (bias=False)
    compute_dtype : dtype of MXU operands (jnp.bfloat16 recommended on v6e/v7x);
                    accumulation is always f32.
    fuse_taps : None = auto (fuse K taps into one dot when K*H <= 256).
    """
    B, S, H = x.shape
    H_out, H_in, K = weight.shape
    assert H_out == H and H_in == H and K % 2 == 1
    out_dtype = x.dtype

    if fuse_taps is None:
        fuse_taps = (K * H) <= 256

    xbytes = jnp.dtype(x.dtype).itemsize
    obytes = jnp.dtype(out_dtype).itemsize
    cbytes = jnp.dtype(compute_dtype).itemsize

    cap = _vmem_capacity_bytes()
    budget = int(0.70 * cap)                  # headroom for compiler internals

    # --- batch tiling ---------------------------------------------------------
    # Bt must divide B (no wrapper-side padding / extra HBM round trip), keep
    # n_blocks >= 2 when possible (v7x megacore), target ~1K rows per step,
    # and fit the per-generation VMEM budget.
    bt_cap = B if B < 2 else max(1, B // 2)
    rows_cap = max(1, 1024 // S)
    allowed = max(1, min(bt_cap, rows_cap))
    Bt = 1
    for d in range(allowed, 0, -1):
        if B % d == 0 and _per_step_vmem_bytes(
                d, S, H, K, xbytes, obytes, cbytes, fuse_taps) <= budget:
            Bt = d
            break
    # TODO(synk): if even Bt=1 exceeds the VMEM budget (very large S*H), add an
    # S-tiled grid axis with a (K-1)-row halo instead of a single S block.
    n_blocks = B // Bt

    est = _per_step_vmem_bytes(Bt, S, H, K, xbytes, obytes, cbytes, fuse_taps)
    vmem_limit = int(min(max(int(est * 1.5), 32 * 2 ** 20), int(0.75 * cap)))

    # Fold the K taps into the contraction dim: w2[j*H + i, o] = weight[o, i, j].
    w2 = jnp.transpose(weight, (2, 1, 0)).reshape(K * H, H).astype(compute_dtype)

    kernel = _make_textcnn_kernel(Bt, S, H, K, compute_dtype, fuse_taps)

    out = pl.pallas_call(
        kernel,
        out_shape=jax.ShapeDtypeStruct((B, S, H), out_dtype),
        grid_spec=pltpu.PrefetchScalarGridSpec(
            num_scalar_prefetch=0,
            grid=(n_blocks,),
            in_specs=[
                pl.BlockSpec((Bt, S, H), lambda b: (b, 0, 0)),
                pl.BlockSpec((K * H, H), lambda b: (0, 0)),
            ],
            out_specs=pl.BlockSpec((Bt, S, H), lambda b: (b, 0, 0)),
            scratch_shapes=[pltpu.VMEM((Bt, S + K - 1, H), compute_dtype)],
        ),
        compiler_params=pltpu.CompilerParams(
            dimension_semantics=("parallel",),
            vmem_limit_bytes=vmem_limit),
    )(x, w2)
    return out


def textcnn_reference(x, weight):
    """Pure-JAX reference of the PyTorch forward (for sanity check)."""
    K = weight.shape[2]
    pad = (K - 1) // 2
    x_pad = jnp.pad(x, ((0, 0), (pad, pad), (0, 0)))
    S = x.shape[1]
    out = jnp.zeros(x.shape, jnp.float32)
    for j in range(K):
        out = out + jnp.einsum(
            'bsh,oh->bso',
            x_pad[:, j:j + S, :].astype(jnp.float32),
            weight[:, :, j].astype(jnp.float32),
            precision=jax.lax.Precision.HIGHEST)
    return out.astype(x.dtype)


if __name__ == "__main__":
    # Small shapes consistent with the module: batch=2, seq=8, hidden=32, kernel=3
    B, S, H, K = 2, 8, 32, 3

    key = jax.random.PRNGKey(0)
    kx, kw = jax.random.split(key)
    x = jax.random.normal(kx, (B, S, H), dtype=jnp.float32)
    # Torch layout Conv1d weight: (out_channels, in_channels, kernel_size)
    weight = jax.random.normal(kw, (H, H, K), dtype=jnp.float32) * 0.1

    ref = textcnn_reference(x, weight)

    # f32 MXU operands, fused im2col path (auto for K*H=96) — strict check
    out_f32 = jax.block_until_ready(textcnn_forward(x, weight))
    assert out_f32.shape == (B, S, H)
    assert jnp.allclose(out_f32, ref, atol=1e-3, rtol=1e-3)

    # K-accumulating-dot path (used automatically for large H) — validate it too
    out_kdot = jax.block_until_ready(textcnn_forward(x, weight, fuse_taps=False))
    assert jnp.allclose(out_kdot, ref, atol=1e-3, rtol=1e-3)

    # bf16 MXU operands, f32 accumulation (v6e/v7x fast path; looser tolerance)
    out_bf16 = jax.block_until_ready(
        textcnn_forward(x, weight, compute_dtype=jnp.bfloat16))
    assert out_bf16.shape == (B, S, H)
    assert jnp.allclose(out_bf16, ref, atol=5e-2, rtol=5e-2)

    print("KERNEL_OK")
</pallas_src>

<mosaic_0001>
module attributes {stable_mosaic.version = 11 : i64} {
  func.func @kernel(%arg0: i32, %arg1: memref<1x8x32xf32, #tpu.memory_space<vmem>>, %arg2: memref<96x32xf32, #tpu.memory_space<vmem>>, %arg3: memref<1x8x32xf32, #tpu.memory_space<vmem>>, %arg4: memref<1x10x32xf32, #tpu.memory_space<vmem>>) attributes {dimension_semantics = [#tpu.dimension_semantics<parallel>], iteration_bounds = array<i64: 2>, scalar_prefetch = 0 : i64, scratch_operands = 1 : i64, tpu.core_type = #tpu.core_type<tc>, window_params = [{transform_indices = @transform_0, window_bounds = array<i64: 1, 8, 32>}, {pipeline_mode = #tpu.pipeline_mode<synchronous>, transform_indices = @transform_1, window_bounds = array<i64: 96, 32>}, {transform_indices = @transform_2, window_bounds = array<i64: 1, 8, 32>}]} {
    %cst = arith.constant 0.000000e+00 : f32
    %0 = vector.broadcast %cst : f32 to vector<1x1x32xf32>
    %c0 = arith.constant 0 : index
    %c0_0 = arith.constant 0 : index
    %c0_1 = arith.constant 0 : index
    %1 = vector.load %arg4[%c0, %c0_0, %c0_1] : memref<1x10x32xf32, #tpu.memory_space<vmem>>, vector<1x1x32xf32>
    tpu.vector_store %arg4[%c0, %c0_0, %c0_1], %0 {strides = array<i32>} : memref<1x10x32xf32, #tpu.memory_space<vmem>>, vector<1x1x32xf32>,
    %c0_2 = arith.constant 0 : index
    %c9 = arith.constant 9 : index
    %c0_3 = arith.constant 0 : index
    %2 = vector.load %arg4[%c0_2, %c9, %c0_3] : memref<1x10x32xf32, #tpu.memory_space<vmem>>, vector<1x1x32xf32>
    tpu.vector_store %arg4[%c0_2, %c9, %c0_3], %0 {strides = array<i32>} : memref<1x10x32xf32, #tpu.memory_space<vmem>>, vector<1x1x32xf32>,
    %c0_4 = arith.constant 0 : index
    %c0_5 = arith.constant 0 : index
    %c0_6 = arith.constant 0 : index
    %3 = vector.load %arg1[%c0_4, %c0_5, %c0_6] : memref<1x8x32xf32, #tpu.memory_space<vmem>>, vector<1x8x32xf32>
    %c0_7 = arith.constant 0 : index
    %c1 = arith.constant 1 : index
    %c0_8 = arith.constant 0 : index
    %4 = vector.load %arg4[%c0_7, %c1, %c0_8] : memref<1x10x32xf32, #tpu.memory_space<vmem>>, vector<1x8x32xf32>
    tpu.vector_store %arg4[%c0_7, %c1, %c0_8], %3 {strides = array<i32>} : memref<1x10x32xf32, #tpu.memory_space<vmem>>, vector<1x8x32xf32>,
    %c0_9 = arith.constant 0 : index
    %c0_10 = arith.constant 0 : index
    %c0_11 = arith.constant 0 : index
    %5 = vector.load %arg4[%c0_9, %c0_10, %c0_11] : memref<1x10x32xf32, #tpu.memory_space<vmem>>, vector<1x8x32xf32>
    %c0_12 = arith.constant 0 : index
    %c1_13 = arith.constant 1 : index
    %c0_14 = arith.constant 0 : index
    %6 = vector.load %arg4[%c0_12, %c1_13, %c0_14] : memref<1x10x32xf32, #tpu.memory_space<vmem>>, vector<1x8x32xf32>
    %c0_15 = arith.constant 0 : index
    %c2 = arith.constant 2 : index
    %c0_16 = arith.constant 0 : index
    %7 = vector.load %arg4[%c0_15, %c2, %c0_16] : memref<1x10x32xf32, #tpu.memory_space<vmem>>, vector<1x8x32xf32>
    %8 = tpu.concatenate %5, %6, %7 in 2 : vector<1x8x32xf32>, vector<1x8x32xf32>, vector<1x8x32xf32> -> vector<1x8x96xf32>
    %9 = vector.shape_cast %8 : vector<1x8x96xf32> to vector<8x96xf32>
    %c0_17 = arith.constant 0 : index
    %c0_18 = arith.constant 0 : index
    %10 = vector.load %arg2[%c0_17, %c0_18] : memref<96x32xf32, #tpu.memory_space<vmem>>, vector<96x32xf32>
    %cst_19 = arith.constant dense<0.000000e+00> : vector<8x32xf32>
    %11 = tpu.matmul %9, %10, %cst_19 {dimension_numbers = #tpu.dot_dimension_numbers<[1], [0], [0], [1], [0, 0, 1, 1], [], []>} : vector<8x96xf32>, vector<96x32xf32>, vector<8x32xf32> -> vector<8x32xf32>
    %12 = vector.shape_cast %11 : vector<8x32xf32> to vector<1x8x32xf32>
    %c0_20 = arith.constant 0 : index
    %c0_21 = arith.constant 0 : index
    %c0_22 = arith.constant 0 : index
    %13 = vector.load %arg3[%c0_20, %c0_21, %c0_22] : memref<1x8x32xf32, #tpu.memory_space<vmem>>, vector<1x8x32xf32>
    tpu.vector_store %arg3[%c0_20, %c0_21, %c0_22], %12 {strides = array<i32>} : memref<1x8x32xf32, #tpu.memory_space<vmem>>, vector<1x8x32xf32>,
    return
  }
  func.func @transform_0(%arg0: i32) -> (i32, i32, i32) {
    %c0_i32 = arith.constant 0 : i32
    %c0_i32_0 = arith.constant 0 : i32
    %c0_i32_1 = arith.constant 0 : i32
    return %arg0, %c0_i32, %c0_i32_0 : i32, i32, i32
  }
  func.func @transform_1(%arg0: i32) -> (i32, i32) {
    %c0_i32 = arith.constant 0 : i32
    %c0_i32_0 = arith.constant 0 : i32
    %c0_i32_1 = arith.constant 0 : i32
    return %c0_i32, %c0_i32_0 : i32, i32
  }
  func.func @transform_2(%arg0: i32) -> (i32, i32, i32) {
    %c0_i32 = arith.constant 0 : i32
    %c0_i32_0 = arith.constant 0 : i32
    %c0_i32_1 = arith.constant 0 : i32
    return %arg0, %c0_i32, %c0_i32_0 : i32, i32, i32
  }
}

</mosaic_0001>

<bundles_post_ra>
// kernel: tpu_custom_call.1
= control target key start
LH: loop header
LB: loop body
LE: loop exit
PB: predicated region body
PF: predicated region fallthrough
CT: control target
= control target key end

     0   :  { %7 = vsyncpa [#allocation4], 0  ;;  %s633_s0 = inlined_call_operand.vmem [shape: f32[2,8,32], index: 0, kind: input, shape index: {}]   ;;  %s634_s1 = inlined_call_operand.vmem [shape: f32[96,32], index: 1, kind: input, shape index: {}]   ;;  %s635_s2 = inlined_call_operand.hbm [shape: f32[2,8,32], index: 2, kind: output, shape index: {}]  }
   0x1   :  { %9 = vsyncpa [#allocation4 + $0x1], 0  ;;  %s495_s9 = smov 0   ;;  %s497_s10 = smov 0  }
   0x2   :  { %s499_s11 = smov 0   ;;  %s501_s12 = smov 0  }
   0x3 LB: > { %s516_s13 = sadd.s32 4294967295, %s473_s12   ;;  %s319_s14 = sadd.s32 4294967294, %s473_s12   ;;  %s473_s12 = sphi %s501_s12, %s641_s12   ;;  %s469_s11 = sphi %s499_s11, %s640_s11   ;;  %s465_s10 = sphi %s497_s10, %s639_s10   ;;  %s461_s9 = sphi %s495_s9, %s638_s9  }
   0x4   : > { %s520_s15 = sadd.s32 1, %s473_s12   ;;  %s69_s16 = sadd.s32 1, %s469_s11 }
   0x5   : > { %s66_s17 = ssub.s32 %s473_s12, %s520_s15  ;;  %p79_p0 = scmp.ne.s32.totalorder %s469_s11, %s465_s10 }
   0x6   : > { %p67_p1 = scmp.eq.s32.totalorder %s66_s17, 0  ;;  %p80_p2 = scmp.eq.s32.totalorder %s516_s13, 1 }
   0x7   : > { %p85_p3 = scmp.ne.s32.totalorder %s465_s10, %s461_s9  ;;  %p86_p4 = scmp.eq.s32.totalorder %s319_s14, 1 }
   0x8   : > { %s531_s18 = scalar_select %p67_p1, %s469_s11, %s69_s16  }
   0x9   : > { %p533_p5 = por %p80_p2, %p79_p0  ;;  %p537_p6 = por %p86_p4, %p85_p3 }
   0xa   : > { %p322_p7 = scmp.ge.s32.totalorder %s473_s12, 1  ;;  %p114_p8 = scmp.lt.s32.totalorder %s473_s12, 3 }
   0xc   : > { %p115_p9 = pnand %p322_p7, %p114_p8 }
   0xd   : > { %p135_p10 = scmp.lt.s32.totalorder (!%p115_p9), %s516_s13, 1  ;;  %s477_s23 = smov (!%p115_p9), 32  }
   0xe   : > { %118 = sbr.rel (%p115_p9) target bundleno = 359 (0x167), region = 28  ;;  %s132_s5 = sand.u32 (!%p115_p9), 1, %s465_s10  }
   0xf   : > { %s323_s6 = sshll.u32 (!%p115_p9), %s132_s5, 3  ;;  %s327_s7 = sshll.u32 (!%p115_p9), %s516_s13, 7 }
  0x10   : > { %s134_s8 = scalar_lea.vmem (!%p115_p9), [#allocation3], %s323_s6  ;;  %s591_s21 = scalar_lea.hbm (!%p115_p9), %s635_s2, %s327_s7 }
  0x11   : > { %s260_s14 = sshll.u32 (!%p115_p9), %s134_s8, 4  ;;  %s247_s22 = scalar_lea.sflag (!%p115_p9), [#allocation4], %s132_s5  ;;  %s593_s14 = int_to_ptr.vmem [resolvable:$true] %s260_s14 }
  0x13   : > { %vm139_vm0 = vcmask 253952   ;;  %v170_v0 = vld [vmem:[%s634_s1 + $0x58] sm:$0xff]  ;;  %v475_v1 = vmov 0.0   ;;  %v169_v2 = vld [vmem:[%s634_s1 + $0x50] sm:$0xff]  ;;  %s136_s25 = scalar_select %p135_p10, %s516_s13, 1  ;;  %v168_v3 = vld [vmem:[%s634_s1 + $0x48] sm:$0xff] }
  0x14   : > { %140 = vst.msk [vmem:[#allocation2] sm:$0x1] %vm139_vm0, %v475_v1  ;;  %141 = vst.msk [vmem:[#allocation2 + $0x9] sm:$0x1] %vm139_vm0, %v475_v1  ;;  %343 = vmatprep.subr.mxu0 %v475_v1  ;;  %vm143_vm1 = vcmask 261120   ;;  %v167_v4 = vld [vmem:[%s634_s1 + $0x40] sm:$0xff] }
  0x15   : > { %344 = vmatpush3.msra.mxu0 %v170_v0  ;;  %s324_s28 = sshll.u32 %s136_s25, 3  ;;  %vm476_vm2 = vmmov 0   ;;  %v166_v6 = vld [vmem:[%s634_s1 + $0x38] sm:$0xff]  ;;  %v165_v7 = vld [vmem:[%s634_s1 + $0x30] sm:$0xff]  ;;  %v164_v8 = vld [vmem:[%s634_s1 + $0x28] sm:$0xff]  ;;  %vm157_vm3 = vcmask 523264  }
  0x16   : > { %345 = vmatprep.subr.mxu0 %v475_v1  ;;  %s138_s3 = scalar_lea.vmem %s633_s0, %s324_s28  ;;  %367 = vmatprep.mubr.msk.f32.mxu0 %vm476_vm2, %v475_v1  ;;  %v163_v9 = vld [vmem:[%s634_s1 + $0x20] sm:$0xff]  ;;  %v162_v11 = vld [vmem:[%s634_s1 + $0x18] sm:$0xff]  ;;  %v161_v13 = vld [vmem:[%s634_s1 + $0x10] sm:$0xff]  ;;  %s478_s28 = smov 64   ;;  %vm171_vm4 = vcmask 785408  }
  0x17   : > { %346 = vmatpush3.msra.mxu0 %v169_v2  ;;  %v142_v5 = vld [vmem:[%s138_s3] sm:$0xff]  ;;  %v160_v14 = vld [vmem:[%s634_s1 + $0x8] sm:$0xff]  ;;  %s479_s13 = smov [#allocation3]  }
  0x18   : > { %347 = vmatprep.subr.mxu0 %v475_v1  ;;  %144 = vst.msk [vmem:[#allocation2 + $0x1] sm:$0xff] %vm143_vm1, %v142_v5  ;;  %v159_v15 = vld [vmem:[%s634_s1] sm:$0xff]  ;;  %s417_s24 = sshll.u32 %s479_s13, 4  ;;  %s418_s24 = int_to_ptr.vmem [resolvable:$false] %s417_s24 }
  0x19   : > { %348 = vmatpush3.msra.mxu0 %v168_v3  ;;  %s419_s25 = scalar_lea.vmem %s418_s24, 256  ;;  %p420_p0 = scmp.lt.s32.totalorder %s593_s14, %s418_s24 }
  0x1a   : > { %349 = vmatprep.subr.mxu0 %v475_v1 }
  0x1b   : > { %350 = vmatpush3.msra.mxu0 %v167_v4 }
  0x1c   : > { %351 = vmatprep.subr.mxu0 %v475_v1 }
  0x1d   : > { %352 = vmatpush3.msra.mxu0 %v166_v6 }
  0x1e   : > { %353 = vmatprep.subr.mxu0 %v475_v1 }
  0x1f   : > { %354 = vmatpush3.msra.mxu0 %v165_v7  ;;  %v146_v10 = vld [vmem:[#allocation2 + $0x1] sm:$0xff] }
  0x20   : > { %355 = vmatprep.subr.mxu0 %v475_v1  ;;  %149 = vrot.lane.b32.xlu0 %v146_v10, %s477_s23  ;;  %v147_v12 = vld [vmem:[#allocation2 + $0x2] sm:$0xff]  ;;  %s413_s23 = scalar_lea.vmem %s593_s14, 128 }
  0x21   : > { %356 = vmatpush3.msra.mxu0 %v164_v8  ;;  %v145_v17 = vld [vmem:[#allocation2] sm:$0xff]  ;;  %p414_p11 = scmp.ne.s32.totalorder %s593_s14, %s413_s23  ;;  %p421_p1 = scmp.lt.s32.totalorder %s419_s25, %s413_s23 }
  0x22   : > { %357 = vmatprep.subr.mxu0 %v475_v1 }
  0x23   : > { %358 = vmatpush3.msra.mxu0 %v163_v9  ;;  %p415_p12 = pnand %p414_p11, %p533_p5  ;;  %p422_p2 = por %p421_p1, %p420_p0 }
  0x24   : > { %359 = vmatprep.subr.mxu0 %v475_v1  ;;  %153 = vrot.lane.b32.xlu0 %v147_v12, %s478_s28 }
  0x25   : > { %360 = vmatpush3.msra.mxu0 %v162_v11  ;;  %p416_p13 = pneg %p415_p12 }
  0x26   : > { %361 = vmatprep.subr.mxu0 %v475_v1 }
  0x27   : > { %362 = vmatpush3.msra.mxu0 %v161_v13  ;;  %p423_p3 = pnand %p422_p2, %p416_p13 }
  0x28   : > { %363 = vmatprep.subr.mxu0 %v475_v1 }
  0x29   : > { %364 = vmatpush3.msra.mxu0 %v160_v14 }
  0x2a   : > { %365 = vmatprep.subr.mxu0 %v475_v1 }
  0x2b   : > { %366 = vmatpush3.msra.mxu0 %v159_v15 }
  0x92   : > { %v150_v16 = vpop.permute.xlu0 %149 }
  0x93   : > { %v156_v18 = vsel %vm143_vm1, %v145_v17, %v150_v16 }
  0x96   : > { %v154_v19 = vpop.permute.xlu0 %153 }
  0x97   : > { %v158_v20 = vsel %vm157_vm3, %v156_v18, %v154_v19 }
  0x98   : > { %368 = vmatmul.mubr.msk.f32.vlgmr.msra.gmra.mxu0 %vm171_vm4, %v158_v20 }
 0x158   : > { %v241_v21 = vpop.f32.mrf.mxu0 }
 0x159   : > { %245 = vst.msk [vmem:[%s134_s8] sm:$0xff] %vm143_vm1, %v241_v21 }
 0x15a   : > { %v369_v22 = vpop.f32.mrf.mxu0 }
 0x15b   : > { %426 = shalt.err (!%p423_p3)
}
 0x15c   : > { %s427_s26 = scalar_lea.hbm %s591_s21, 128  ;;  %s431_s29 = scalar_lea.hbm %s635_s2, 256 }
 0x15d   : > { %p428_p4 = scmp.ne.s32.totalorder %s591_s21, %s427_s26  ;;  %p432_p9 = scmp.lt.s32.totalorder %s591_s21, %s635_s2 }
 0x15e   : > { %p433_p10 = scmp.lt.s32.totalorder %s431_s29, %s427_s26 }
 0x15f   : > { %p429_p7 = pnand %p428_p4, %p533_p5 }
 0x160   : > { %p434_p11 = por %p433_p10, %p432_p9 }
 0x161   : > { %p430_p8 = pneg %p429_p7 }
 0x163   : > { %p435_p12 = pnand %p434_p11, %p430_p8 }
 0x165   : > { %438 = shalt.err (!%p435_p12)
}
 0x166   : > { %370 = dma.vmem_to_hbm [thread:$0]  (%p533_p5), %s593_s14, 128, %s591_s21, %s247_s22  }
 0x167 PF: > { %p376_p13 = scmp.ge.s32.totalorder %s473_s12, 2  ;;  %s272_s4 = sand.u32 1, %s461_s9  }
 0x168   : > { %s273_s5 = scalar_lea.sflag [#allocation4], %s272_s4 }
 0x169   : > { %p373_p0 = pnand %p376_p13, %p537_p6 }
 0x16b   : > { %p374_p1 = pneg %p373_p0 }
 0x16d   : > { %456 = dma.done.wait (%p374_p1), %s273_s5, 128  }
 0x16e   : > { %458 = vsyncadd (%p374_p1), %s273_s5, 4294967168  ;;  %p12_p2 = scmp.ge.s32.totalorder %s520_s15, 4   ;;  %s638_s9 = smov %s465_s10 }
 0x16f   : > { %s639_s10 = smov %s469_s11  ;;  %s640_s11 = smov %s531_s18 }
 0x170   : > { %s641_s12 = smov %s520_s15  ;;  %14 = sbr.rel (!%p12_p2) target bundleno = 3 (0x3), region = 63 }
 0x175   :  { %278 = vsyncpa [#allocation4], 1 }
 0x176   :  { %280 = vsyncpa [#allocation4 + $0x1], 1 }

</bundles_post_ra>
